<compile_context>
chip_gen: v7x
topology: tpu7x:2x2x1
jax: 0.10.0
libtpu: 0.0.40
codegen_flags: <defaults>
</compile_context>

<pallas_src>
import functools

import jax
import jax.numpy as jnp
import numpy as np
from jax.experimental import pallas as pl
from jax.experimental.pallas import tpu as pltpu


def _conv_bn_relu_kernel(w_ref, a_ref, bias_ref, o_ref):
    # (Cout, K) bf16 @ (K, TM) bf16 -> f32 on the MXU, then bias + ReLU on VPU.
    acc = jnp.dot(w_ref[...], a_ref[...], preferred_element_type=jnp.float32)
    o_ref[...] = jnp.maximum(acc + bias_ref[...], 0.0).astype(o_ref.dtype)


def _im2col_nhwc(x_nhwc, kh, kw, stride, padding, dilation):
    """Extract conv patches (plain-JAX glue). Returns (M, K), K order (kh, kw, cin)."""
    n, h, w, c = x_nhwc.shape
    xp = jnp.pad(x_nhwc, ((0, 0), (padding, padding), (padding, padding), (0, 0)))
    ho = (h + 2 * padding - dilation * (kh - 1) - 1) // stride + 1
    wo = (w + 2 * padding - dilation * (kw - 1) - 1) // stride + 1
    cols = []
    for i in range(kh):
        for j in range(kw):
            patch = xp[
                :,
                i * dilation : i * dilation + stride * (ho - 1) + 1 : stride,
                j * dilation : j * dilation + stride * (wo - 1) + 1 : stride,
                :,
            ]
            cols.append(patch)
    a = jnp.concatenate(cols, axis=-1)            # (N, HO, WO, KH*KW*Cin)
    return a.reshape(n * ho * wo, kh * kw * c), ho, wo


@functools.partial(jax.jit, static_argnames=("stride", "padding", "dilation"))
def basic_conv_forward(x_nchw, weight, gamma, beta, running_mean, running_var,
                       *, stride=1, padding=0, dilation=1, eps=1e-5):
    """BasicConv forward: conv (bias=False) + BN (inference fold) + ReLU."""
    n, cin, h, w = x_nchw.shape
    cout, _, kh, kw = weight.shape

    # --- glue: im2col + BN-folded weight packing (host/XLA side) ---
    x_nhwc = jnp.transpose(x_nchw, (0, 2, 3, 1))
    a, ho, wo = _im2col_nhwc(x_nhwc, kh, kw, stride, padding, dilation)   # (M, K)
    a_t = a.T                                                             # (K, M)

    scale = gamma / jnp.sqrt(running_var + eps)                           # (Cout,)
    bias = (beta - running_mean * scale).reshape(cout, 1).astype(jnp.float32)

    # weight (Cout, Cin, KH, KW) -> (Cout, KH*KW*Cin); K ordering matches im2col.
    w_t = jnp.transpose(weight, (0, 2, 3, 1)).reshape(cout, kh * kw * cin)
    w_t = (w_t * scale[:, None]).astype(jnp.bfloat16)   # fold BN scale, bf16 MXU path
    a_t = a_t.astype(jnp.bfloat16)

    m = n * ho * wo
    k = kh * kw * cin

    # Lane tiling over M: >=2 parallel grid steps (one per v7x TensorCore), each
    # a multiple of 128 lanes, capped so per-step VMEM stays tiny everywhere.
    lane = 128
    max_tm = 2048
    num_steps = max(2, -(-m // max_tm))
    tm = -(-m // (num_steps * lane)) * lane
    m_pad = tm * num_steps
    if m_pad != m:
        a_t = jnp.pad(a_t, ((0, 0), (0, m_pad - m)))

    cost = pl.CostEstimate(
        flops=2 * m_pad * k * cout,
        transcendentals=0,
        bytes_accessed=a_t.size * 2 + w_t.size * 2 + bias.size * 4 + cout * m_pad * 4,
    )

    # --- Pallas fused matmul + BN-bias + ReLU, lane-dense (Cout, M) output ---
    out_t = pl.pallas_call(
        _conv_bn_relu_kernel,
        out_shape=jax.ShapeDtypeStruct((cout, m_pad), jnp.float32),
        grid_spec=pltpu.PrefetchScalarGridSpec(
            num_scalar_prefetch=0,
            grid=(num_steps,),
            in_specs=[
                pl.BlockSpec((cout, k), lambda i: (0, 0)),   # BN-folded weight^T
                pl.BlockSpec((k, tm), lambda i: (0, i)),     # A^T lane tile
                pl.BlockSpec((cout, 1), lambda i: (0, 0)),   # BN bias
            ],
            out_specs=pl.BlockSpec((cout, tm), lambda i: (0, i)),
        ),
        compiler_params=pltpu.CompilerParams(dimension_semantics=("parallel",)),
        cost_estimate=cost,
    )(w_t, a_t, bias)

    out_t = out_t[:, :m]                          # drop M padding -> (Cout, M)
    out = out_t.reshape(cout, n, ho, wo)          # (Cout, N, HO, WO)
    return jnp.transpose(out, (1, 0, 2, 3))       # back to NCHW


if __name__ == "__main__":
    # Module config (typical CBAM usage): in=4, out=8, k=3, pad=1, stride=1.
    N, CIN, H, W = 2, 4, 16, 16
    COUT, KH, KW = 8, 3, 3
    STRIDE, PAD, DIL = 1, 1, 1

    key = jax.random.PRNGKey(0)
    kx, kw_, kg, kb = jax.random.split(key, 4)

    x = jax.random.normal(kx, (N, CIN, H, W), dtype=jnp.float32)
    weight = jax.random.normal(kw_, (COUT, CIN, KH, KW), dtype=jnp.float32) * 0.1
    gamma = 1.0 + 0.1 * jax.random.normal(kg, (COUT,), dtype=jnp.float32)
    beta = 0.1 * jax.random.normal(kb, (COUT,), dtype=jnp.float32)
    running_mean = jnp.zeros((COUT,), dtype=jnp.float32)   # PyTorch BN init
    running_var = jnp.ones((COUT,), dtype=jnp.float32)     # PyTorch BN init

    out = basic_conv_forward(
        x, weight, gamma, beta, running_mean, running_var,
        stride=STRIDE, padding=PAD, dilation=DIL,
    )
    out = jax.block_until_ready(out)

    # Reference: XLA conv with the same bf16-cast, BN-folded weight (matched
    # precision: bf16 operands, f32 accumulate), then bias + ReLU in f32.
    eps = 1e-5
    scale = gamma / jnp.sqrt(running_var + eps)
    bias = beta - running_mean * scale
    w_folded = (weight * scale[:, None, None, None]).astype(jnp.bfloat16)
    ref = jax.lax.conv_general_dilated(
        x.astype(jnp.bfloat16), w_folded,
        window_strides=(STRIDE, STRIDE),
        padding=[(PAD, PAD), (PAD, PAD)], rhs_dilation=(DIL, DIL),
        dimension_numbers=("NCHW", "OIHW", "NCHW"),
        preferred_element_type=jnp.float32,
    )
    ref = jnp.maximum(ref + bias[None, :, None, None], 0.0)

    assert out.shape == (N, COUT, H, W), out.shape
    np.testing.assert_allclose(np.asarray(out), np.asarray(ref), rtol=5e-3, atol=5e-3)
    print("KERNEL_OK")
</pallas_src>

<mosaic_0001>
module attributes {stable_mosaic.version = 11 : i64} {
  func.func @_conv_bn_relu_kernel(%arg0: i32, %arg1: memref<8x36xbf16, #tpu.memory_space<vmem>>, %arg2: memref<36x256xbf16, #tpu.memory_space<vmem>>, %arg3: memref<8x1xf32, #tpu.memory_space<vmem>>, %arg4: memref<8x256xf32, #tpu.memory_space<vmem>>) attributes {dimension_semantics = [#tpu.dimension_semantics<parallel>], iteration_bounds = array<i64: 2>, scalar_prefetch = 0 : i64, scratch_operands = 0 : i64, tpu.core_type = #tpu.core_type<tc>, window_params = [{pipeline_mode = #tpu.pipeline_mode<synchronous>, transform_indices = @transform_0, window_bounds = array<i64: 8, 36>}, {transform_indices = @transform_1, window_bounds = array<i64: 36, 256>}, {pipeline_mode = #tpu.pipeline_mode<synchronous>, transform_indices = @transform_2, window_bounds = array<i64: 8, 1>}, {transform_indices = @transform_3, window_bounds = array<i64: 8, 256>}]} {
    %c0 = arith.constant 0 : index
    %c0_0 = arith.constant 0 : index
    %0 = vector.load %arg1[%c0, %c0_0] : memref<8x36xbf16, #tpu.memory_space<vmem>>, vector<8x36xbf16>
    %c0_1 = arith.constant 0 : index
    %c0_2 = arith.constant 0 : index
    %1 = vector.load %arg2[%c0_1, %c0_2] : memref<36x256xbf16, #tpu.memory_space<vmem>>, vector<36x256xbf16>
    %cst = arith.constant dense<0.000000e+00> : vector<8x256xf32>
    %2 = tpu.matmul %0, %1, %cst {dimension_numbers = #tpu.dot_dimension_numbers<[1], [0], [0], [1], [0, 0, 1, 1], [], []>} : vector<8x36xbf16>, vector<36x256xbf16>, vector<8x256xf32> -> vector<8x256xf32>
    %c0_3 = arith.constant 0 : index
    %c0_4 = arith.constant 0 : index
    %3 = vector.load %arg3[%c0_3, %c0_4] : memref<8x1xf32, #tpu.memory_space<vmem>>, vector<8x1xf32>
    %4 = vector.broadcast %3 : vector<8x1xf32> to vector<8x256xf32>
    %5 = arith.addf %2, %4 : vector<8x256xf32>
    %cst_5 = arith.constant 0.000000e+00 : f32
    %6 = vector.broadcast %cst_5 : f32 to vector<8x256xf32>
    %7 = arith.maximumf %5, %6 : vector<8x256xf32>
    %c0_6 = arith.constant 0 : index
    %c0_7 = arith.constant 0 : index
    %8 = vector.load %arg4[%c0_6, %c0_7] : memref<8x256xf32, #tpu.memory_space<vmem>>, vector<8x256xf32>
    tpu.vector_store %arg4[%c0_6, %c0_7], %7 {strides = array<i32>} : memref<8x256xf32, #tpu.memory_space<vmem>>, vector<8x256xf32>,
    return
  }
  func.func @transform_0(%arg0: i32) -> (i32, i32) {
    %c0_i32 = arith.constant 0 : i32
    %c0_i32_0 = arith.constant 0 : i32
    %c0_i32_1 = arith.constant 0 : i32
    return %c0_i32, %c0_i32_0 : i32, i32
  }
  func.func @transform_1(%arg0: i32) -> (i32, i32) {
    %c0_i32 = arith.constant 0 : i32
    %c0_i32_0 = arith.constant 0 : i32
    return %c0_i32, %arg0 : i32, i32
  }
  func.func @transform_2(%arg0: i32) -> (i32, i32) {
    %c0_i32 = arith.constant 0 : i32
    %c0_i32_0 = arith.constant 0 : i32
    %c0_i32_1 = arith.constant 0 : i32
    return %c0_i32, %c0_i32_0 : i32, i32
  }
  func.func @transform_3(%arg0: i32) -> (i32, i32) {
    %c0_i32 = arith.constant 0 : i32
    %c0_i32_0 = arith.constant 0 : i32
    return %c0_i32, %arg0 : i32, i32
  }
}

</mosaic_0001>

<bundles_post_ra>
// kernel: basic_conv_forward.1
= control target key start
LH: loop header
LB: loop body
LE: loop exit
PB: predicated region body
PF: predicated region fallthrough
CT: control target
= control target key end

     0   :  { %s481_s12 = smov 0   ;;  %s483_s13 = smov 0   ;;  %s539_s0 = inlined_call_operand.vmem [shape: bf16[8,36], index: 0, kind: input, shape index: {}]   ;;  %s540_s1 = inlined_call_operand.vmem [shape: bf16[36,512], index: 1, kind: input, shape index: {}]   ;;  %s541_s2 = inlined_call_operand.vmem [shape: f32[8,1], index: 2, kind: input, shape index: {}]   ;;  %s542_s3 = inlined_call_operand.vmem [shape: f32[8,512], index: 3, kind: output, shape index: {}]  }
   0x1   :  { %s485_s14 = smov 0  }
   0x2 LB: > { %s380_s15 = sadd.s32 4294967295, %s458_s14   ;;  %s498_s16 = sadd.s32 1, %s458_s14   ;;  %s458_s14 = sphi %s485_s14, %s545_s14   ;;  %s454_s13 = sphi %s483_s13, %s544_s13   ;;  %s450_s12 = sphi %s481_s12, %s543_s12  }
   0x3   : > { %s38_s17 = ssub.s32 %s458_s14, %s498_s16  ;;  %s41_s18 = sadd.s32 1, %s454_s13 }
   0x4   : > { %p39_p0 = scmp.eq.s32.totalorder %s38_s17, 0  ;;  %p48_p1 = scmp.ne.s32.totalorder %s454_s13, %s450_s12 }
   0x5   : > { %p49_p2 = scmp.eq.s32.totalorder %s458_s14, 0  ;;  %p383_p4 = scmp.ge.s32.totalorder %s458_s14, 2 }
   0x6   : > { %s507_s19 = scalar_select %p39_p0, %s454_s13, %s41_s18  }
   0x7   : > { %p50_p3 = por %p49_p2, %p48_p1  ;;  %127 = sbr.rel (%p383_p4) target bundleno = 21 (0x15), region = 24 }
   0xe   : > { %130 = sbr.rel (!%p50_p3) target bundleno = 21 (0x15), region = 28  ;;  %s132_s20 = sand.u32 (%p50_p3), 1, %s454_s13  }
   0xf   : > { %s399_s21 = sshll.u32 (%p50_p3), %s458_s14, 3  ;;  %s400_s22 = smul.u32 (%p50_p3), 40, %s132_s20 }
  0x10   : > { %s137_s25 = scalar_lea.vmem (%p50_p3), %s540_s1, %s399_s21 }
  0x11   : > { %v173_v0 = vld [vmem:[%s137_s25] sm:$0xff] (%p50_p3)  ;;  %v175_v1 = vld [vmem:[%s137_s25 + $0x10] sm:$0xff] (%p50_p3)  ;;  %s134_s26 = scalar_lea.vmem (%p50_p3), [#allocation2], %s400_s22 }
  0x12   : > { %v177_v2 = vld [vmem:[%s137_s25 + $0x20] sm:$0xff] (%p50_p3)  ;;  %v179_v3 = vld [vmem:[%s137_s25 + $0x30] sm:$0xff] (%p50_p3)  ;;  %174 = vst [vmem:[%s134_s26] sm:$0xff] (%p50_p3), %v173_v0  ;;  %176 = vst [vmem:[%s134_s26 + $0x8] sm:$0xff] (%p50_p3), %v175_v1 }
  0x13   : > { %v181_v4 = vld [vmem:[%s137_s25 + $0x40] sm:$0xff] (%p50_p3)  ;;  %178 = vst [vmem:[%s134_s26 + $0x10] sm:$0xff] (%p50_p3), %v177_v2  ;;  %180 = vst [vmem:[%s134_s26 + $0x18] sm:$0xff] (%p50_p3), %v179_v3 }
  0x14   : > { %182 = vst [vmem:[%s134_s26 + $0x20] sm:$0xff] (%p50_p3), %v181_v4 }
  0x15 PF: > { %p386_p5 = scmp.ge.s32.totalorder %s458_s14, 1  ;;  %p187_p6 = scmp.lt.s32.totalorder %s458_s14, 3 }
  0x17   : > { %p188_p7 = pnand %p386_p5, %p187_p6 }
  0x18   : > { %s194_s27 = sand.u32 (!%p188_p7), 1, %s450_s12   ;;  %v460_v5 = vmov (!%p188_p7), 0   ;;  %v231_v6 = vld [vmem:[%s541_s2] sm:$0xff] (!%p188_p7)  ;;  %vm266_vm0 = vcmask (!%p188_p7), 1041408   ;;  %vm262_vm1 = vcmask (!%p188_p7), 293888   ;;  %s387_s7 = sshll.u32 (!%p188_p7), %s380_s15, 1 }
  0x19   : > { %191 = sbr.rel (%p188_p7) target bundleno = 260 (0x104), region = 66  ;;  %305 = vmatprep.mubr.bf16.mxu0 (!%p188_p7), %v460_v5  ;;  %427 = vset.pattern.permute.xlu0 (!%p188_p7), %v460_v5  ;;  %v225_v15 = vld [vmem:[%s539_s0] sm:$0xf] (!%p188_p7)  ;;  %p219_p8 = scmp.lt.s32.totalorder (!%p188_p7), %s387_s7, 3 }
  0x1a   : > { %s401_s28 = smul.u32 (!%p188_p7), 40, %s194_s27  ;;  %234 = vperm.xlu0 (!%p188_p7), %427, %v231_v6  }
  0x1c   : > { %s196_s4 = scalar_lea.vmem (!%p188_p7), [#allocation2], %s401_s28 }
  0x1d   : > { %v428_v7 = vld [vmem:[%s196_s4 + $0x4] ss:$8 sps:$4 sm:$0xff] (!%p188_p7)   ;;  %v430_v8 = vld [vmem:[%s196_s4] ss:$8 sps:$4 sm:$0xff] (!%p188_p7)   ;;  %v431_v9 = vld [vmem:[%s196_s4 + $0x14] ss:$8 sps:$4 sm:$0xff] (!%p188_p7)  }
  0x1e   : > { %273 = vmatprep.subr.bf16.mxu0 (!%p188_p7), %v428_v7  ;;  %v230_v10 = vld [vmem:[%s196_s4 + $0x20] sm:$0x33] (!%p188_p7)  ;;  %v433_v11 = vld [vmem:[%s196_s4 + $0x10] ss:$8 sps:$4 sm:$0xff] (!%p188_p7)  }
  0x1f   : > { %274 = vmatpush1.bf16.msra.mxu0 (!%p188_p7), %v430_v8  ;;  %v394_v12 = vcombine.high (!%p188_p7), %v230_v10, %v230_v10  ;;  %v393_v13 = vcombine.low (!%p188_p7), %v230_v10, %v230_v10 }
  0x20   : > { %275 = vmatprep.subr.bf16.mxu0 %v431_v9  ;;  %s547_s7 = smov (!%p219_p8, %s387_s7), 3 }
  0x21   : > { %v268_v14 = vsel %vm266_vm0, %v393_v13, 0  ;;  %s388_s8 = sshll.u32 %s547_s7, 3 }
  0x22   : > { %s222_s11 = scalar_lea.vmem %s542_s3, %s388_s8 }
  0x23   : > { %276 = vmatpush1.bf16.msra.mxu0 %v433_v11 }
  0x24   : > { %395 = vmatprep.subr.msk.bf16.mxu0 %vm266_vm0, %v394_v12 }
  0x27   : > { %278 = vmatpush1.bf16.msra.mxu0 %v268_v14 }
  0x2a   : > { %396 = vmatmul.mubr.msk.bf16.vlgmr.msra.gmra.mrb[0].mxu0 %vm262_vm1, %v225_v15 }
  0x99   : > { %v235_v16 = vpop.permute.xlu0 %234 }
  0xfd   : > { %v307_v17 = vpop.f32.mrb[0].mxu0 }
  0xfe   : > { %v308_v18 = vadd.f32 %v307_v17, %v235_v16  ;;  %v309_v19 = vpop.f32.mrb[1].mxu0 }
  0xff   : > { %v310_v20 = vadd.f32 %v309_v19, %v235_v16  ;;  %v311_v21 = vpop.f32.mrb[2].mxu0 }
 0x100   : > { %v314_v22 = vmax.f32 %v308_v18, 0.0  ;;  %v312_v23 = vpop.f32.mrb[3].mxu0 }
 0x101   : > { %v315_v24 = vmax.f32 %v310_v20, 0.0 }
 0x102   : > { %316 = vst [vmem:[%s222_s11] sm:$0xff] %v314_v22 }
 0x103   : > { %317 = vst [vmem:[%s222_s11 + $0x8] sm:$0xff] %v315_v24 }
 0x104 PF: > { %p10_p9 = scmp.ge.s32.totalorder %s498_s16, 4   ;;  %s543_s12 = smov %s454_s13 }
 0x105   : > { %s544_s13 = smov %s507_s19  ;;  %s545_s14 = smov %s498_s16 }
 0x106   :  { %12 = sbr.rel (!%p10_p9) target bundleno = 2 (0x2), region = 105 }

</bundles_post_ra>
